<compile_context>
chip_gen: v7x
topology: tpu7x:2x2x1
jax: 0.10.0
libtpu: 0.0.40
codegen_flags: <defaults>
</compile_context>

<pallas_src>
import functools

import jax
import jax.numpy as jnp
from jax.experimental import pallas as pl
from jax.experimental.pallas import tpu as pltpu


def _round_up(x, m):
    return ((x + m - 1) // m) * m


def _ce_label_smooth_kernel(x_ref, y_ref, o_ref, *, epsilon, num_classes,
                            batch, block_b):
    """One batch tile: logits (TB, C), labels (TB, 1) -> partial loss sum (1,1,1)."""
    x = x_ref[...].astype(jnp.float32)        # (TB, C) logits, f32 math
    y = y_ref[...]                            # (TB, 1) int32 class indices
    tb, c = x.shape

    # Numerically stable log-softmax pieces (class axis = lanes).
    m = jnp.max(x, axis=1, keepdims=True)                              # (TB, 1)
    shifted = x - m                                                    # (TB, C)
    lse = jnp.log(jnp.sum(jnp.exp(shifted), axis=1, keepdims=True))    # (TB, 1)

    # Fused label-gather + smoothing reduction:
    #   weight_j = (1-eps)*[j == y_i] + eps/C   (sum_j weight_j == 1)
    #   loss_i   = lse_i - sum_j weight_j * shifted_ij
    lane = jax.lax.broadcasted_iota(jnp.int32, (1, c), 1)              # (1, C)
    weight = jnp.where(lane == y,
                       1.0 - epsilon + epsilon / num_classes,
                       epsilon / num_classes)                          # (TB, C)
    wsum = jnp.sum(weight * shifted, axis=1, keepdims=True)            # (TB, 1)

    loss = lse - wsum                                                  # (TB, 1)

    if batch % block_b != 0:                  # mask edge-block padded rows
        i = pl.program_id(0)
        row = jax.lax.broadcasted_iota(jnp.int32, (tb, 1), 0) + i * block_b
        loss = jnp.where(row < batch, loss, 0.0)

    # Per-block partial sum (fused reduction); the tiny final sum / (1/B)
    # scaling runs in XLA outside the kernel.
    o_ref[...] = jnp.sum(loss).reshape(1, 1, 1)


def ce_label_smooth(logits, labels, *, num_classes, epsilon=0.1, block_b=None):
    """logits: (B, C) float (f32/bf16); labels: (B,) int class ids.

    Returns the scalar mean label-smoothed cross-entropy loss (f32).
    Prefer bf16 logits at this boundary on v5e/v6e (HBM-bound); math is f32.
    """
    B, C = logits.shape
    assert C == num_classes

    x = logits
    y = labels.astype(jnp.int32).reshape(B, 1)

    # Tiny-batch safety: keep >= 8 sublane rows (negligible cost when B < 8).
    if B < 8:
        x = jnp.pad(x, ((0, 8 - B), (0, 0)))
        y = jnp.pad(y, ((0, 8 - B), (0, 0)))
    rows = max(B, 8)

    c_lanes = _round_up(C, 128)               # physical lane footprint of a row
    itemsize = jnp.dtype(logits.dtype).itemsize

    # Per-generation sizing: v7x has only 64 MiB VMEM/TC; v5e/v6e have 128 MiB.
    try:
        vmem_cap = int(pltpu.get_tpu_info().vmem_capacity_bytes)
    except Exception:
        vmem_cap = 64 << 20                   # conservative (v7x-safe) fallback
    small_vmem = vmem_cap <= (64 << 20)

    # Batch tile sized by the *f32* in-kernel footprint (tile is cast to f32
    # and f32 temporaries stay live), not the input itemsize.
    if block_b is None:
        f32_block_budget = (6 << 20) if small_vmem else (12 << 20)
        tb = f32_block_budget // (c_lanes * 4)
        tb = max(8, min(1024, (tb // 8) * 8))
    else:
        tb = max(8, (block_b // 8) * 8)

    # Guarantee >= 2 grid blocks when there is enough work, so the "parallel"
    # batch axis can be sharded across v7x's two TensorCores.
    if rows > 8:
        tb = min(tb, max(8, _round_up(pl.cdiv(rows, 2), 8)))
    tb = min(tb, _round_up(rows, 8))

    nb = pl.cdiv(rows, tb)

    kernel = functools.partial(
        _ce_label_smooth_kernel,
        epsilon=float(epsilon),
        num_classes=int(num_classes),
        batch=int(B),
        block_b=int(tb),
    )

    # VMEM: double-buffered input block + ~4 f32 full-tile temporaries
    # + double-buffered label block + headroom.
    block_f32 = tb * c_lanes * 4
    vmem_need = (2 * tb * c_lanes * itemsize      # pipelined logits blocks
                 + 4 * block_f32                  # f32 cast / shifted / exp / weighted
                 + 2 * tb * 128 * 4               # pipelined label blocks (lane-padded)
                 + (4 << 20))                     # headroom for Mosaic scratch
    vmem_cap_limit = (48 << 20) if small_vmem else (96 << 20)
    vmem_limit = int(min(max(vmem_need, 32 << 20), vmem_cap_limit))

    partials = pl.pallas_call(
        kernel,
        out_shape=jax.ShapeDtypeStruct((nb, 1, 1), jnp.float32),
        grid_spec=pltpu.PrefetchScalarGridSpec(
            num_scalar_prefetch=0,
            grid=(nb,),
            in_specs=[
                # Full-extent class dim (== C): no wrapper-side padding needed.
                pl.BlockSpec((tb, C), lambda i: (i, 0)),   # logits tile
                pl.BlockSpec((tb, 1), lambda i: (i, 0)),   # labels tile
            ],
            out_specs=pl.BlockSpec((1, 1, 1), lambda i: (i, 0, 0)),
        ),
        compiler_params=pltpu.CompilerParams(
            dimension_semantics=("parallel",),   # lets v7x split batch over 2 TCs
            vmem_limit_bytes=vmem_limit,
        ),
    )(x, y)

    return jnp.sum(partials) / jnp.float32(B)


def _reference(logits, labels, *, num_classes, epsilon=0.1):
    x = logits.astype(jnp.float32)
    log_probs = jax.nn.log_softmax(x, axis=1)
    t = jax.nn.one_hot(labels, num_classes, dtype=jnp.float32)
    t = (1.0 - epsilon) * t + epsilon / num_classes
    return jnp.mean(jnp.sum(-t * log_probs, axis=1))


if __name__ == "__main__":
    key = jax.random.PRNGKey(0)
    k1, k2, k3, k4 = jax.random.split(key, 4)
    eps = 0.1

    # Case 1: small shape matching the module's typical use (B=8, C=16).
    B, C = 8, 16
    logits = jax.random.normal(k1, (B, C), dtype=jnp.float32)
    labels = jax.random.randint(k2, (B,), 0, C)
    loss = ce_label_smooth(logits, labels, num_classes=C, epsilon=eps)
    loss = jax.block_until_ready(loss)
    ref = _reference(logits, labels, num_classes=C, epsilon=eps)
    assert jnp.allclose(loss, ref, atol=1e-5, rtol=1e-5), (loss, ref)

    # Case 2: ragged B and C (exercises edge-block row masking across multiple
    #         grid steps, non-128 class dim), bf16 logits at the boundary.
    B2, C2 = 21, 200
    logits2 = jax.random.normal(k3, (B2, C2), dtype=jnp.float32).astype(jnp.bfloat16)
    labels2 = jax.random.randint(k4, (B2,), 0, C2)
    loss2 = ce_label_smooth(logits2, labels2, num_classes=C2, epsilon=eps, block_b=8)
    loss2 = jax.block_until_ready(loss2)
    ref2 = _reference(logits2, labels2, num_classes=C2, epsilon=eps)
    assert jnp.allclose(loss2, ref2, atol=1e-4, rtol=1e-4), (loss2, ref2)

    print("KERNEL_OK")
</pallas_src>

<mosaic_0001>
module attributes {stable_mosaic.version = 11 : i64} {
  func.func @_ce_label_smooth_kernel(%arg0: i32, %arg1: memref<8x16xf32, #tpu.memory_space<vmem>>, %arg2: memref<8x1xi32, #tpu.memory_space<vmem>>, %arg3: memref<1x1x1xf32, #tpu.memory_space<vmem>>) attributes {dimension_semantics = [#tpu.dimension_semantics<parallel>], iteration_bounds = array<i64: 1>, scalar_prefetch = 0 : i64, scratch_operands = 0 : i64, tpu.core_type = #tpu.core_type<tc>, window_params = [{transform_indices = @transform_0, window_bounds = array<i64: 8, 16>}, {transform_indices = @transform_1, window_bounds = array<i64: 8, 1>}, {transform_indices = @transform_2, window_bounds = array<i64: 1, 1, 1>}]} {
    %c0 = arith.constant 0 : index
    %c0_0 = arith.constant 0 : index
    %0 = vector.load %arg1[%c0, %c0_0] : memref<8x16xf32, #tpu.memory_space<vmem>>, vector<8x16xf32>
    %c0_1 = arith.constant 0 : index
    %c0_2 = arith.constant 0 : index
    %1 = vector.load %arg2[%c0_1, %c0_2] : memref<8x1xi32, #tpu.memory_space<vmem>>, vector<8x1xi32>
    %cst = arith.constant dense<0xFF800000> : vector<8xf32>
    %2 = vector.multi_reduction <maximumf>, %0, %cst [1] : vector<8x16xf32> to vector<8xf32>
    %3 = vector.shape_cast %2 : vector<8xf32> to vector<8x1xf32>
    %4 = vector.broadcast %3 : vector<8x1xf32> to vector<8x16xf32>
    %5 = arith.subf %0, %4 : vector<8x16xf32>
    %6 = math.exp %5 : vector<8x16xf32>
    %cst_3 = arith.constant dense<0.000000e+00> : vector<8xf32>
    %7 = vector.multi_reduction <add>, %6, %cst_3 [1] : vector<8x16xf32> to vector<8xf32>
    %8 = vector.shape_cast %7 : vector<8xf32> to vector<8x1xf32>
    %9 = math.log %8 : vector<8x1xf32>
    %10 = tpu.iota {dimensions = array<i32: 1>} : vector<1x16xi32>
    %11 = vector.broadcast %10 : vector<1x16xi32> to vector<8x16xi32>
    %12 = vector.broadcast %1 : vector<8x1xi32> to vector<8x16xi32>
    %13 = arith.cmpi eq, %11, %12 : vector<8x16xi32>
    %cst_4 = arith.constant 9.062500e-01 : f32
    %cst_5 = arith.constant 6.250000e-03 : f32
    %14 = vector.broadcast %cst_4 : f32 to vector<8x16xf32>
    %15 = vector.broadcast %cst_5 : f32 to vector<8x16xf32>
    %16 = arith.select %13, %14, %15 : vector<8x16xi1>, vector<8x16xf32>
    %17 = arith.mulf %16, %5 : vector<8x16xf32>
    %cst_6 = arith.constant dense<0.000000e+00> : vector<8xf32>
    %18 = vector.multi_reduction <add>, %17, %cst_6 [1] : vector<8x16xf32> to vector<8xf32>
    %19 = vector.shape_cast %18 : vector<8xf32> to vector<8x1xf32>
    %20 = arith.subf %9, %19 : vector<8x1xf32>
    %21 = vector.shape_cast %20 : vector<8x1xf32> to vector<1x8x1xf32>
    %cst_7 = arith.constant dense<0.000000e+00> : vector<1xf32>
    %22 = vector.multi_reduction <add>, %21, %cst_7 [1, 2] : vector<1x8x1xf32> to vector<1xf32>
    %23 = vector.shape_cast %22 : vector<1xf32> to vector<1x1x1xf32>
    %24 = vector.extract %23[0, 0, 0] : f32 from vector<1x1x1xf32>
    %25 = vector.broadcast %24 : f32 to vector<1x1x1xf32>
    %c0_8 = arith.constant 0 : index
    %c0_9 = arith.constant 0 : index
    %c0_10 = arith.constant 0 : index
    %26 = vector.load %arg3[%c0_8, %c0_9, %c0_10] : memref<1x1x1xf32, #tpu.memory_space<vmem>>, vector<1x1x1xf32>
    tpu.vector_store %arg3[%c0_8, %c0_9, %c0_10], %25 {strides = array<i32>} : memref<1x1x1xf32, #tpu.memory_space<vmem>>, vector<1x1x1xf32>,
    return
  }
  func.func @transform_0(%arg0: i32) -> (i32, i32) {
    %c0_i32 = arith.constant 0 : i32
    %c0_i32_0 = arith.constant 0 : i32
    return %arg0, %c0_i32 : i32, i32
  }
  func.func @transform_1(%arg0: i32) -> (i32, i32) {
    %c0_i32 = arith.constant 0 : i32
    %c0_i32_0 = arith.constant 0 : i32
    return %arg0, %c0_i32 : i32, i32
  }
  func.func @transform_2(%arg0: i32) -> (i32, i32, i32) {
    %c0_i32 = arith.constant 0 : i32
    %c0_i32_0 = arith.constant 0 : i32
    %c0_i32_1 = arith.constant 0 : i32
    return %arg0, %c0_i32, %c0_i32_0 : i32, i32, i32
  }
}

</mosaic_0001>

<bundles_post_ra>
// kernel: tpu_custom_call.1
= control target key start
LH: loop header
LB: loop body
LE: loop exit
PB: predicated region body
PF: predicated region fallthrough
CT: control target
= control target key end

     0   :  { %vm14_vm0 = vcmask 130048   ;;  %s139_s0 = inlined_call_operand.vmem [shape: f32[8,16], index: 0, kind: input, shape index: {}]   ;;  %s140_s1 = inlined_call_operand.vmem [shape: s32[8,1], index: 1, kind: input, shape index: {}]   ;;  %s141_s2 = inlined_call_operand.hbm [shape: f32[1,1,1], index: 2, kind: output, shape index: {}]  }
   0x1   :  { %v12_v0 = vld [vmem:[%s139_s0] sm:$0xff] }
   0x2   :  { %7 = vsyncpa [#allocation3], 0  ;;  %v15_v1 = vsel %vm14_vm0, %v12_v0, -inf  ;;  %v100_v2 = vmov 0   ;;  %v13_v3 = vld [vmem:[%s140_s1] sm:$0xff]  ;;  %v26_v6 = vlaneseq  ;;  %vm38_vm2 = vcmask 7168  }
   0x3   :  { %71 = vset.pattern.permute.xlu0 %v100_v2  ;;  %v101_v10 = vmov 0.00625   ;;  %s102_s0 = smov [#allocation2]   ;;  %vm50_vm3 = vcmask 0  }
   0x4   :  { %16 = vmax.xlane.f32.xlu0 %v15_v1  ;;  %v27_v8 = vand.u32 127, %v26_v6  ;;  %s58_s1 = sshll.u32 %s102_s0, 4  ;;  %s59_s1 = int_to_ptr.vmem [resolvable:$true] %s58_s1 }
   0x5   :  { %s76_s14 = scalar_lea.vmem %s59_s1, 16  ;;  %s80_s15 = scalar_lea.vmem %s59_s1, 32 }
   0x6   :  { %p77_p0 = scmp.ne.s32.totalorder %s59_s1, %s76_s14  ;;  %p81_p1 = scmp.lt.s32.totalorder %s59_s1, %s59_s1 }
   0x7   :  { %p82_p2 = scmp.lt.s32.totalorder %s80_s15, %s76_s14 }
   0x9   :  { %p83_p3 = por %p82_p2, %p81_p1 }
   0xb   :  { %p84_p4 = pnand %p83_p3, %p77_p0 }
  0x1a   :  { %29 = vperm.xlu0 %71, %v13_v3  }
  0x91   :  { %v17_v4 = vpop.xlane.xlu0 %16 }
  0x92   :  { %v18_v5 = vsub.f32 %v12_v0, %v17_v4 }
  0x94   :  { %v19_v7 = vmul.f32 1.442695, %v18_v5 }
  0x96   :  { %72 = vpow2.f32 %v19_v7 }
  0x99   :  { %v30_v9 = vpop.permute.xlu0 %29 }
  0x9a   :  { %vm31_vm1 = vcmp.eq.s32.totalorder %v27_v8, %v30_v9 }
  0x9b   :  { %v32_v11 = vsel %vm31_vm1, 0.90625, %v101_v10 }
  0x9c   :  { %v33_v14 = vmul.f32 %v32_v11, %v18_v5 }
  0x9e   :  { %v34_v15 = vsel %vm14_vm0, %v33_v14, 0.0 }
  0xa0   :  { %v73_v12 = vpop.eup %72 }
  0xa1   :  { %v21_v13 = vsel %vm14_vm0, %v73_v12, 0.0 }
  0xa2   :  { %22 = vadd.xlane.f32.xlu1 %v21_v13 }
  0xa6   :  { %35 = vadd.xlane.f32.xlu1 %v34_v15 }
 0x12f   :  { %v23_v16 = vpop.xlane.xlu1 %22 }
 0x130   :  { %74 = vlog2.f32 %v23_v16 }
 0x133   :  { %v36_v19 = vpop.xlane.xlu1 %35 }
 0x13a   :  { %v75_v17 = vpop.eup %74 }
 0x13b   :  { %v25_v18 = vmul.f32 0.6931472, %v75_v17 }
 0x13d   :  { %v37_v20 = vsub.f32 %v25_v18, %v36_v19 }
 0x13f   :  { %v39_v21 = vsel %vm38_vm2, %v37_v20, 0.0 }
 0x140   :  { %40 = vadd.xlane.f32.xlu1 %v39_v21 }
 0x1cd   :  { %v41_v22 = vpop.xlane.xlu1 %40 }
 0x1ce   :  { %v42_v23 = vrot.slane %v41_v22, 4 }
 0x1d0   :  { %v43_v24 = vadd.f32 %v42_v23, %v41_v22 }
 0x1d2   :  { %v44_v25 = vrot.slane %v43_v24, 2 }
 0x1d4   :  { %v45_v26 = vadd.f32 %v44_v25, %v43_v24 }
 0x1d6   :  { %v46_v27 = vrot.slane %v45_v26, 1 }
 0x1d8   :  { %v47_v28 = vadd.f32 %v46_v27, %v45_v26 }
 0x1da   :  { %66 = vpush %v47_v28 }
 0x20b   :  { %s67_s13 = spop %66 }
 0x20c   :  { %v49_v29 = vstv %s67_s13 }
 0x20d   :  { %51 = vst.msk [vmem:[#allocation2] sm:$0x1] %vm50_vm3, %v49_v29 }
 0x20e   :  { %87 = shalt.err (!%p84_p4)
}
 0x20f   :  { %s88_s18 = scalar_lea.hbm %s141_s2, 16 }
 0x210   :  { %p89_p5 = scmp.ne.s32.totalorder %s141_s2, %s88_s18  ;;  %p92_p6 = scmp.lt.u32.totalorder %s88_s18, %s141_s2 }
 0x212   :  { %p94_p7 = pnand %p92_p6, %p89_p5 }
 0x214   :  { %97 = shalt.err (!%p94_p7)
}
 0x215   :  { %61 = dma.vmem_to_hbm [thread:$0]  %s59_s1, 16, %s141_s2, [#allocation3]  }
 0x216   :  { %98 = dma.done.wait [#allocation3], 16  }
 0x217   :  { %99 = vsyncadd [#allocation3], 4294967280 }
 0x218   :  { %65 = vsyncpa [#allocation3], 1 }

</bundles_post_ra>
